<compile_context>
chip_gen: v6e
topology: v6e:2x2x1
jax: 0.10.0
libtpu: 0.0.40
codegen_flags: <defaults>
</compile_context>

<pallas_src>
import jax
import jax.numpy as jnp
from jax.experimental import pallas as pl
from jax.experimental.pallas import tpu as pltpu


def _round_up(x, m):
    return (x + m - 1) // m * m


def _unit3d_kernel(patch_ref, w_ref, scale_ref, shift_ref, out_ref, acc_ref):
    """(tm, tk) x (tk, cout_p) MXU matmul accumulated over the K grid axis."""
    k = pl.program_id(1)

    @pl.when(k == 0)
    def _init():
        acc_ref[...] = jnp.zeros_like(acc_ref)

    acc_ref[...] += jnp.dot(patch_ref[...], w_ref[...],
                            preferred_element_type=jnp.float32)

    @pl.when(k == pl.num_programs(1) - 1)
    def _finish():
        # Eval-mode BN (per-channel f32 scale + shift) and ReLU epilogue.
        y = acc_ref[...] * scale_ref[...] + shift_ref[...]
        out_ref[...] = jnp.maximum(y, 0.0).astype(out_ref.dtype)


def unit3d_forward(x_ncdhw, weight_oidhw, gamma, beta, running_mean,
                   running_var, *, eps=1e-3, tm=512, tk=512,
                   compute_dtype=jnp.bfloat16, out_dtype=jnp.float32):
    """Forward pass of Unit3Dpy (SAME padding, stride 1, no conv bias)."""
    N, Cin, T, H, W = x_ncdhw.shape
    Cout, Cin_w, KT, KH, KW = weight_oidhw.shape
    assert Cin == Cin_w
    assert KT % 2 == 1 and KH % 2 == 1 and KW % 2 == 1, "stride-1 SAME only"

    # NCDHW -> NDHWC (channels last = lane dim); cast to bf16 BEFORE im2col so
    # the K-expanded patches intermediate is written/read at half the width.
    x = jnp.transpose(x_ncdhw, (0, 2, 3, 4, 1)).astype(compute_dtype)

    # TF-style SAME padding, stride 1 (symmetric for odd kernels).
    pt, ph, pw = KT // 2, KH // 2, KW // 2
    x_pad = jnp.pad(x, ((0, 0), (pt, pt), (ph, ph), (pw, pw), (0, 0)))

    # im2col: (M, K*Cin), tap-major / Cin-minor (matches weight reshape below).
    M = N * T * H * W
    K = KT * KH * KW
    KC = K * Cin
    cols = []
    for kt in range(KT):
        for kh in range(KH):
            for kw in range(KW):
                cols.append(
                    x_pad[:, kt:kt + T, kh:kh + H, kw:kw + W, :].reshape(M, Cin))
    patches = jnp.concatenate(cols, axis=-1)           # (M, KC) in bf16

    # Weight (KC, Cout) kept UNscaled; BN scale & shift stay in the f32 epilogue
    # (avoids quantizing gamma/sqrt(var+eps) into bf16 weights).
    w = jnp.transpose(weight_oidhw, (2, 3, 4, 1, 0)).reshape(KC, Cout)
    scale = (gamma / jnp.sqrt(running_var + eps)).astype(jnp.float32)   # (Cout,)
    shift = (beta - running_mean * scale).astype(jnp.float32)           # (Cout,)

    # TPU-friendly padded shapes: lane-dense 128-aligned Cout, 128-aligned
    # contraction chunks, 256-aligned row tiles (MXU fill + bf16 packing).
    cout_p = _round_up(Cout, 128)
    tk_eff = _round_up(min(tk, _round_up(KC, 128)), 128)
    kc_p = _round_up(KC, tk_eff)
    tm_eff = _round_up(min(tm, _round_up(M, 256)), 256)
    m_p = _round_up(M, tm_eff)

    patches = jnp.pad(patches, ((0, m_p - M), (0, kc_p - KC)))
    w = jnp.pad(w, ((0, kc_p - KC), (0, cout_p - Cout))).astype(compute_dtype)
    scale = jnp.pad(scale, (0, cout_p - Cout)).reshape(1, cout_p)
    shift = jnp.pad(shift, (0, cout_p - Cout)).reshape(1, cout_p)

    grid = (m_p // tm_eff, kc_p // tk_eff)
    out_bytes = jnp.dtype(out_dtype).itemsize
    cost = pl.CostEstimate(
        flops=2 * m_p * kc_p * cout_p,
        transcendentals=0,
        bytes_accessed=(m_p * kc_p * 2                    # patches streamed once
                        + grid[0] * kc_p * cout_p * 2     # weights per M-tile
                        + m_p * cout_p * out_bytes))      # output write

    out_flat = pl.pallas_call(
        _unit3d_kernel,
        out_shape=jax.ShapeDtypeStruct((m_p, cout_p), out_dtype),
        grid_spec=pltpu.PrefetchScalarGridSpec(
            num_scalar_prefetch=0,
            grid=grid,                      # (M tiles [parallel], K tiles [arbitrary])
            in_specs=[
                pl.BlockSpec((tm_eff, tk_eff), lambda i, k: (i, k)),   # patches
                pl.BlockSpec((tk_eff, cout_p), lambda i, k: (k, 0)),   # weights
                pl.BlockSpec((1, cout_p), lambda i, k: (0, 0)),        # BN scale
                pl.BlockSpec((1, cout_p), lambda i, k: (0, 0)),        # BN shift
            ],
            out_specs=pl.BlockSpec((tm_eff, cout_p), lambda i, k: (i, 0)),
            scratch_shapes=[pltpu.VMEM((tm_eff, cout_p), jnp.float32)],
        ),
        compiler_params=pltpu.CompilerParams(
            # M tiles independent (megacore-shardable); K is the reduction.
            dimension_semantics=("parallel", "arbitrary"),
            # Above the 16/32 MiB scoped defaults, still <= v7x's 64 MiB physical.
            vmem_limit_bytes=64 * 1024 * 1024,
        ),
        cost_estimate=cost,
    )(patches, w, scale, shift)

    # (M, Cout) -> (N, T, H, W, Cout) -> NCDHW to match PyTorch output layout.
    out = out_flat[:M, :Cout].reshape(N, T, H, W, Cout)
    return jnp.transpose(out, (0, 4, 1, 2, 3))


def _reference(x_ncdhw, weight, gamma, beta, mean, var, eps=1e-3):
    """Pure-JAX f32 reference (lax conv) for correctness checking."""
    y = jax.lax.conv_general_dilated(
        x_ncdhw.astype(jnp.float32), weight.astype(jnp.float32),
        window_strides=(1, 1, 1), padding="SAME",
        dimension_numbers=("NCDHW", "OIDHW", "NCDHW"))
    s = (gamma / jnp.sqrt(var + eps)).reshape(1, -1, 1, 1, 1)
    b = (beta - mean * gamma / jnp.sqrt(var + eps)).reshape(1, -1, 1, 1, 1)
    return jnp.maximum(y * s + b, 0.0)


if __name__ == "__main__":
    key = jax.random.PRNGKey(0)
    k_x, k_w, k_g, k_b, k_m, k_v = jax.random.split(key, 6)

    N, Cin, Cout = 2, 8, 8
    T, H, W = 4, 8, 8
    KT, KH, KW = 3, 3, 3

    x = jax.random.normal(k_x, (N, Cin, T, H, W), dtype=jnp.float32)
    weight = 0.1 * jax.random.normal(k_w, (Cout, Cin, KT, KH, KW),
                                     dtype=jnp.float32)
    gamma = 1.0 + 0.1 * jax.random.normal(k_g, (Cout,), dtype=jnp.float32)
    beta = 0.1 * jax.random.normal(k_b, (Cout,), dtype=jnp.float32)
    running_mean = 0.1 * jax.random.normal(k_m, (Cout,), dtype=jnp.float32)
    running_var = jnp.abs(1.0 + 0.1 * jax.random.normal(
        k_v, (Cout,), dtype=jnp.float32))

    # Small tiles so both grid axes are exercised: M=512, KC=216 with
    # tm=256 / tk=128 -> grid (2, 2): parallel M axis AND the K reduction
    # axis with accumulator init/finalize.
    out = unit3d_forward(x, weight, gamma, beta, running_mean, running_var,
                         tm=256, tk=128, compute_dtype=jnp.bfloat16,
                         out_dtype=jnp.float32)
    out = jax.block_until_ready(out)

    ref = _reference(x, weight, gamma, beta, running_mean, running_var)
    assert out.shape == ref.shape == (N, Cout, T, H, W)
    # bf16 inputs + f32 accumulation over a depth-216 contraction.
    assert jnp.allclose(out, ref, atol=5e-2, rtol=5e-2), (
        float(jnp.max(jnp.abs(out - ref))))

    print("KERNEL_OK")
</pallas_src>

<mosaic_0001>
module attributes {stable_mosaic.version = 11 : i64} {
  func.func @_unit3d_kernel(%arg0: i32, %arg1: i32, %arg2: memref<256x128xbf16, #tpu.memory_space<vmem>>, %arg3: memref<128x128xbf16, #tpu.memory_space<vmem>>, %arg4: memref<1x128xf32, #tpu.memory_space<vmem>>, %arg5: memref<1x128xf32, #tpu.memory_space<vmem>>, %arg6: memref<256x128xf32, #tpu.memory_space<vmem>>, %arg7: memref<256x128xf32, #tpu.memory_space<vmem>>) attributes {dimension_semantics = [#tpu.dimension_semantics<parallel>, #tpu.dimension_semantics<arbitrary>], iteration_bounds = array<i64: 2, 2>, scalar_prefetch = 0 : i64, scratch_operands = 1 : i64, tpu.core_type = #tpu.core_type<tc>, window_params = [{transform_indices = @transform_0, window_bounds = array<i64: 256, 128>}, {transform_indices = @transform_1, window_bounds = array<i64: 128, 128>}, {pipeline_mode = #tpu.pipeline_mode<synchronous>, transform_indices = @transform_2, window_bounds = array<i64: 1, 128>}, {pipeline_mode = #tpu.pipeline_mode<synchronous>, transform_indices = @transform_3, window_bounds = array<i64: 1, 128>}, {transform_indices = @transform_4, window_bounds = array<i64: 256, 128>}]} {
    %c0_i32 = arith.constant 0 : i32
    %0 = arith.cmpi eq, %arg1, %c0_i32 : i32
    %1 = arith.extui %0 : i1 to i32
    %c0_i32_0 = arith.constant 0 : i32
    %2 = arith.cmpi ne, %1, %c0_i32_0 : i32
    scf.if %2 {
      %cst_9 = arith.constant 0.000000e+00 : f32
      %12 = vector.broadcast %cst_9 : f32 to vector<256x128xf32>
      %c0_10 = arith.constant 0 : index
      %c0_11 = arith.constant 0 : index
      %13 = vector.load %arg7[%c0_10, %c0_11] : memref<256x128xf32, #tpu.memory_space<vmem>>, vector<256x128xf32>
      tpu.vector_store %arg7[%c0_10, %c0_11], %12 {strides = array<i32>} : memref<256x128xf32, #tpu.memory_space<vmem>>, vector<256x128xf32>,
    } else {
    }
    %c0 = arith.constant 0 : index
    %c0_1 = arith.constant 0 : index
    %3 = vector.load %arg7[%c0, %c0_1] : memref<256x128xf32, #tpu.memory_space<vmem>>, vector<256x128xf32>
    %c0_2 = arith.constant 0 : index
    %c0_3 = arith.constant 0 : index
    %4 = vector.load %arg2[%c0_2, %c0_3] : memref<256x128xbf16, #tpu.memory_space<vmem>>, vector<256x128xbf16>
    %c0_4 = arith.constant 0 : index
    %c0_5 = arith.constant 0 : index
    %5 = vector.load %arg3[%c0_4, %c0_5] : memref<128x128xbf16, #tpu.memory_space<vmem>>, vector<128x128xbf16>
    %cst = arith.constant dense<0.000000e+00> : vector<256x128xf32>
    %6 = tpu.matmul %4, %5, %cst {dimension_numbers = #tpu.dot_dimension_numbers<[1], [0], [0], [1], [0, 0, 1, 1], [], []>} : vector<256x128xbf16>, vector<128x128xbf16>, vector<256x128xf32> -> vector<256x128xf32>
    %7 = arith.addf %3, %6 : vector<256x128xf32>
    %c0_6 = arith.constant 0 : index
    %c0_7 = arith.constant 0 : index
    %8 = vector.load %arg7[%c0_6, %c0_7] : memref<256x128xf32, #tpu.memory_space<vmem>>, vector<256x128xf32>
    tpu.vector_store %arg7[%c0_6, %c0_7], %7 {strides = array<i32>} : memref<256x128xf32, #tpu.memory_space<vmem>>, vector<256x128xf32>,
    %c1_i32 = arith.constant 1 : i32
    %9 = arith.cmpi eq, %arg1, %c1_i32 : i32
    %10 = arith.extui %9 : i1 to i32
    %c0_i32_8 = arith.constant 0 : i32
    %11 = arith.cmpi ne, %10, %c0_i32_8 : i32
    scf.if %11 {
      %c0_9 = arith.constant 0 : index
      %c0_10 = arith.constant 0 : index
      %12 = vector.load %arg7[%c0_9, %c0_10] : memref<256x128xf32, #tpu.memory_space<vmem>>, vector<256x128xf32>
      %c0_11 = arith.constant 0 : index
      %c0_12 = arith.constant 0 : index
      %13 = vector.load %arg4[%c0_11, %c0_12] : memref<1x128xf32, #tpu.memory_space<vmem>>, vector<1x128xf32>
      %14 = vector.broadcast %13 : vector<1x128xf32> to vector<256x128xf32>
      %15 = arith.mulf %12, %14 : vector<256x128xf32>
      %c0_13 = arith.constant 0 : index
      %c0_14 = arith.constant 0 : index
      %16 = vector.load %arg5[%c0_13, %c0_14] : memref<1x128xf32, #tpu.memory_space<vmem>>, vector<1x128xf32>
      %17 = vector.broadcast %16 : vector<1x128xf32> to vector<256x128xf32>
      %18 = arith.addf %15, %17 : vector<256x128xf32>
      %cst_15 = arith.constant 0.000000e+00 : f32
      %19 = vector.broadcast %cst_15 : f32 to vector<256x128xf32>
      %20 = arith.maximumf %18, %19 : vector<256x128xf32>
      %c0_16 = arith.constant 0 : index
      %c0_17 = arith.constant 0 : index
      %21 = vector.load %arg6[%c0_16, %c0_17] : memref<256x128xf32, #tpu.memory_space<vmem>>, vector<256x128xf32>
      tpu.vector_store %arg6[%c0_16, %c0_17], %20 {strides = array<i32>} : memref<256x128xf32, #tpu.memory_space<vmem>>, vector<256x128xf32>,
    } else {
    }
    return
  }
  func.func @transform_0(%arg0: i32, %arg1: i32) -> (i32, i32) {
    %c0_i32 = arith.constant 0 : i32
    return %arg0, %arg1 : i32, i32
  }
  func.func @transform_1(%arg0: i32, %arg1: i32) -> (i32, i32) {
    %c0_i32 = arith.constant 0 : i32
    %c0_i32_0 = arith.constant 0 : i32
    return %arg1, %c0_i32 : i32, i32
  }
  func.func @transform_2(%arg0: i32, %arg1: i32) -> (i32, i32) {
    %c0_i32 = arith.constant 0 : i32
    %c0_i32_0 = arith.constant 0 : i32
    %c0_i32_1 = arith.constant 0 : i32
    return %c0_i32, %c0_i32_0 : i32, i32
  }
  func.func @transform_3(%arg0: i32, %arg1: i32) -> (i32, i32) {
    %c0_i32 = arith.constant 0 : i32
    %c0_i32_0 = arith.constant 0 : i32
    %c0_i32_1 = arith.constant 0 : i32
    return %c0_i32, %c0_i32_0 : i32, i32
  }
  func.func @transform_4(%arg0: i32, %arg1: i32) -> (i32, i32) {
    %c0_i32 = arith.constant 0 : i32
    %c0_i32_0 = arith.constant 0 : i32
    return %arg0, %c0_i32 : i32, i32
  }
}

</mosaic_0001>

<bundles_post_ra>
// kernel: tpu_custom_call.1
= control target key start
LH: loop header
LB: loop body
LE: loop exit
PB: predicated region body
PF: predicated region fallthrough
CT: control target
= control target key end

     0   :  { %s2029_s0 = inlined_call_operand.hbm [shape: bf16[512,256], index: 0, kind: input, shape index: {}]   ;;  %s2030_s1 = inlined_call_operand.hbm [shape: bf16[256,128], index: 1, kind: input, shape index: {}]   ;;  %s2031_s2 = inlined_call_operand.vmem [shape: f32[1,128], index: 2, kind: input, shape index: {}]   ;;  %s2032_s3 = inlined_call_operand.vmem [shape: f32[1,128], index: 3, kind: input, shape index: {}]   ;;  %s2033_s4 = inlined_call_operand.hbm [shape: f32[512,128], index: 4, kind: output, shape index: {}]  }
   0x1   :  { %2040 = sst [smem:[#allocation17_spill]] %s2029_s0 }
   0x2   :  { %2041 = sst [smem:[#allocation18_spill]] %s2030_s1 }
   0x3   :  { %2042 = sst [smem:[#allocation19_spill]] %s2031_s2 }
   0x4   :  { %2043 = sst [smem:[#allocation20_spill]] %s2032_s3 }
   0x5   :  { %2044 = sst [smem:[#allocation21_spill]] %s2033_s4 }
   0x6   :  { %9 = vsyncpa [#allocation4], 0 }
   0x7   :  { %11 = vsyncpa [#allocation4 + $0x1], 0 }
   0x8   :  { %12 = vsyncpa [#allocation7], 0 }
   0x9   :  { %14 = vsyncpa [#allocation7 + $0x1], 0 }
   0xa   :  { %15 = vsyncpa [#allocation5], 0 }
   0xb   :  { %17 = vsyncpa [#allocation5 + $0x1], 0  ;;  %s1602_s15 = smov 0   ;;  %s1604_s16 = smov 0  }
   0xc   :  { %s1606_s17 = smov 0   ;;  %s1608_s18 = smov 0  }
   0xd   :  { %s1610_s19 = smov 0   ;;  %s1612_s20 = smov 0  }
   0xe   :  { %s1614_s21 = smov 0   ;;  %s1616_s22 = smov 0  }
   0xf   :  { %s1618_s23 = smov 0   ;;  %s1620_s24 = smov 0  }
  0x10   :  { %s1622_s25 = smov 0   ;;  %s1624_s26 = smov 0  }
  0x11   :  { %s1626_s27 = smov 0   ;;  %s1628_s28 = smov 0  }
  0x12 LB: > { %2045 = sst [smem:[#allocation12_spill]] %s1514_s15  ;;  %s32_s29 = sadd.s32 1, %s1558_s26  ;;  %s1566_s28 = sphi %s1628_s28, %s23_s28   ;;  %s1562_s27 = sphi %s1626_s27, %s2088_s27   ;;  %s1558_s26 = sphi %s1624_s26, %s2087_s26   ;;  %s1554_s25 = sphi %s1622_s25, %s2086_s25   ;;  %s1550_s24 = sphi %s1620_s24, %s2085_s24   ;;  %s1546_s23 = sphi %s1618_s23, %s2084_s23   ;;  %s1542_s22 = sphi %s1616_s22, %s2083_s22   ;;  %s1538_s21 = sphi %s1614_s21, %s2082_s21   ;;  %s1534_s20 = sphi %s1612_s20, %s2081_s20   ;;  %s1530_s19 = sphi %s1610_s19, %s2080_s19   ;;  %s1526_s18 = sphi %s1608_s18, %s2079_s18   ;;  %s1522_s17 = sphi %s1606_s17, %s2078_s17   ;;  %s1518_s16 = sphi %s1604_s16, %s2077_s16   ;;  %s1514_s15 = sphi %s1602_s15, %s2076_s15  }
  0x13   : > { %2046 = sst [smem:[#allocation13_spill]] %s1550_s24  ;;  %s35_s30 = sadd.s32 1, %s1562_s27 }
  0x14   : > { %2047 = sst [smem:[#allocation14_spill]] %s1554_s25  ;;  %p33_p0 = scmp.ge.s32.totalorder %s32_s29, 2 }
  0x15   : > { %s44_s5 = sadd.s32 1, %s1546_s23  ;;  %p51_p1 = scmp.ne.s32.totalorder %s1546_s23, %s1542_s22 }
  0x16   : > { %p52_p2 = scmp.eq.s32.totalorder %s1566_s28, 0  ;;  %s2090_s29 = smov (%p33_p0, %s32_s29), 0 }
  0x17   : > { %2048 = sst [smem:[#allocation15_spill]] %s2090_s29  ;;  %s2092_s30 = smov (!%p33_p0, %s35_s30), %s1562_s27 }
  0x18   : > { %s1683_s6 = ssub.s32 %s1558_s26, %s2090_s29  ;;  %p1687_p3 = por %p52_p2, %p51_p1 }
  0x19   : > { %p37_p4 = scmp.ge.s32.totalorder %s2092_s30, 2  ;;  %p57_p5 = scmp.ne.s32.totalorder %s1542_s22, %s1538_s21 }
  0x1a   : > { %p68_p6 = scmp.eq.s32.totalorder %s1683_s6, 0  ;;  %s138_s8 = sadd.s32 1, %s1522_s17 }
  0x1b   : > { %s2094_s30 = smov (%p37_p4, %s2092_s30), 0  ;;  %p2036_p7 = scmp.lt.s32.totalorder %s1566_s28, 4 }
  0x1c   : > { %2050 = sst [smem:[#allocation16_spill]] %s2094_s30  ;;  %s39_s9 = ssub.s32 %s1562_s27, %s2094_s30 }
  0x1d   : > { %s181_s10 = sand.u32 1, %s1546_s23   ;;  %s41_s11 = sor.u32 %s1683_s6, %s39_s9 }
  0x1e   : > { %p136_p8 = scmp.eq.s32.totalorder %s39_s9, 0  ;;  %p42_p9 = scmp.eq.s32.totalorder %s41_s11, 0 }
  0x1f   : > { %s1066_s14 = sshll.u32 %s181_s10, 7  ;;  %s1110_s29 = sshll.u32 %s1562_s27, 6 }
  0x20   : > { %s1703_s12 = scalar_select %p136_p8, %s1522_s17, %s138_s8  }
  0x21   : > { %s1706_s13 = scalar_select %p42_p9, %s1546_s23, %s44_s5  }
  0x22   : > { %s191_s4 = sadd.s32 %s1558_s26, %s1110_s29  ;;  %s185_s3 = scalar_lea.vmem [#allocation3], %s1066_s14 }
  0x23   : > { %s1069_s25 = sshll.u32 %s191_s4, 6  ;;  %s194_s2 = sshll.u32 %s185_s3, 4  ;;  %s195_s2 = int_to_ptr.vmem [resolvable:$true] %s194_s2 }
  0x24   : > { %s2051_s0 = sld [smem:[#allocation17_spill]]  ;;  %p1717_p10 = pnand %p2036_p7, %p1687_p3 }
  0x25   : > { %p1073_p11 = scmp.ge.s32.totalorder %s1566_s28, 1  ;;  %s182_s5 = scalar_lea.sflag [#allocation4], %s181_s10 }
  0x26   : > { %p1364_p12 = pneg %p1717_p10  ;;  %s1375_s29 = scalar_lea.vmem %s195_s2, 2048 }
  0x27   : > { %p1376_p13 = scmp.ne.s32.totalorder %s195_s2, %s1375_s29  ;;  %s1568_s3 = smov [#allocation3]  }
  0x28   : > { %s1380_s4 = sshll.u32 %s1568_s3, 4  ;;  %s1381_s4 = int_to_ptr.vmem [resolvable:$false] %s1380_s4 }
  0x29   : > { %p1378_p0 = pnand %p1376_p13, %p1364_p12  ;;  %s1382_s1 = scalar_lea.vmem %s1381_s4, 4096 }
  0x2a   : > { %s193_s15 = scalar_lea.hbm %s2051_s0, %s1069_s25  ;;  %p1383_p4 = scmp.lt.s32.totalorder %s195_s2, %s1381_s4 }
  0x2b   : > { %p1379_p1 = pneg %p1378_p0  ;;  %p1384_p8 = scmp.lt.s32.totalorder %s1382_s1, %s1375_s29 }
  0x2d   : > { %p1385_p9 = por %p1384_p8, %p1383_p4 }
  0x2f   : > { %p1386_p3 = pnand %p1385_p9, %p1379_p1 }
  0x31   : > { %1389 = shalt.err (!%p1386_p3)
}
  0x32   : > { %s1569_s24 = smov 128   ;;  %s2037_s25 = smov 64  }
  0x33   : > { %s2038_s7 = smov 4   ;;  %s2053_s8 = sld [smem:[#allocation12_spill]] }
  0x34   : > { %1210 = dma.hbm_to_vmem [thread:$0]  (!%p1717_p10), %s193_s15, 2048, %s195_s2, %s182_s5, %s1569_s24, %s2037_s25, %s2038_s7  }
  0x35   : > { %p223_p12 = scmp.lt.s32.totalorder %s1566_s28, 5  ;;  %s1062_s11 = sadd.s32 4294967295, %s1566_s28  }
  0x36   : > { %s1063_s14 = sadd.s32 4294967294, %s1566_s28   ;;  %p58_p0 = scmp.eq.s32.totalorder %s1062_s11, 0 }
  0x37   : > { %p1731_p13 = pnand %p1073_p11, %p223_p12  ;;  %s70_s29 = sadd.s32 1, %s1534_s20 }
  0x38   : > { %s1741_s3 = scalar_select %p68_p6, %s1534_s20, %s70_s29  }
  0x39   : > { %p1746_p1 = por %p58_p0, %p57_p5  ;;  %p77_p10 = scmp.ne.s32.totalorder %s1534_s20, %s1530_s19 }
  0x3a   : > { %p83_p11 = scmp.ne.s32.totalorder %s1530_s19, %s1526_s18  ;;  %p148_p4 = scmp.ne.s32.totalorder %s1522_s17, %s1518_s16 }
  0x3b   : > { %p79_p8 = por %p77_p10, %p52_p2  ;;  %p149_p9 = scmp.eq.s32.totalorder %s1062_s11, 3 }
  0x3c   : > { %p1758_p3 = por %p83_p11, %p58_p0  ;;  %p154_p12 = scmp.ne.s32.totalorder %s1518_s16, %s2053_s8 }
  0x3d   : > { %p1764_p7 = por %p149_p9, %p148_p4  ;;  %p155_p6 = scmp.eq.s32.totalorder %s1063_s14, 3 }
  0x3e   : > { %s204_s21 = sand.u32 1, %s1534_s20   ;;  %s1111_s6 = sshll.u32 %s1558_s26, 10 }
  0x3f   : > { %p1770_p5 = por %p155_p6, %p154_p12  ;;  %s1070_s18 = sshll.u32 %s204_s21, 6 }
  0x40   : > { %s2059_s24 = sld [smem:[#allocation18_spill]]  ;;  %p2060_p2 = scmp.lt.s32.totalorder %s1566_s28, 4 }
  0x41   : > { %s208_s8 = scalar_lea.vmem [#allocation6], %s1070_s18  ;;  %s205_s14 = scalar_lea.sflag [#allocation7], %s204_s21 }
  0x42   : > { %p1779_p0 = pnand %p2060_p2, %p79_p8  ;;  %s215_s25 = sshll.u32 %s208_s8, 4  ;;  %s216_s25 = int_to_ptr.vmem [resolvable:$true] %s215_s25 }
  0x43   : > { %s1403_s7 = scalar_lea.vmem %s216_s25, 1024  ;;  %s1572_s0 = smov [#allocation6]  }
  0x44   : > { %p1392_p10 = pneg %p1779_p0  ;;  %p1404_p11 = scmp.ne.s32.totalorder %s216_s25, %s1403_s7 }
  0x45   : > { %s1408_s30 = sshll.u32 %s1572_s0, 4  ;;  %s1409_s30 = int_to_ptr.vmem [resolvable:$false] %s1408_s30 }
  0x46   : > { %s214_s11 = scalar_lea.hbm %s2059_s24, %s1111_s6  ;;  %p1406_p4 = pnand %p1404_p11, %p1392_p10 }
  0x47   : > { %s1410_s6 = scalar_lea.vmem %s1409_s30, 2048  ;;  %p1411_p12 = scmp.lt.s32.totalorder %s216_s25, %s1409_s30 }
  0x48   : > { %p1407_p9 = pneg %p1406_p4  ;;  %p1412_p8 = scmp.lt.s32.totalorder %s1410_s6, %s1403_s7 }
  0x4a   : > { %p1413_p6 = por %p1412_p8, %p1411_p12 }
  0x4c   : > { %p1414_p2 = pnand %p1413_p6, %p1407_p9 }
  0x4e   : > { %1417 = shalt.err (!%p1414_p2)
}
  0x4f   : > { %s2062_s18 = smov 4   ;;  %s2063_s4 = smov 64  }
  0x50   : > { %1213 = dma.hbm_to_vmem [thread:$0]  (!%p1779_p0), %s214_s11, 1024, %s216_s25, %s205_s14, %s2063_s4, %s2063_s4, %s2062_s18  }
  0x51   : > { %227 = sbr.rel (%p1731_p13) target bundleno = 436 (0x1b4), region = 36  ;;  %s229_s21 = sand.u32 (!%p1731_p13), 1, %s1542_s22  }
  0x52   : > { %s1074_s0 = sshll.u32 (!%p1731_p13), %s229_s21, 7  ;;  %s230_s1 = scalar_lea.sflag (!%p1731_p13), [#allocation4], %s229_s21 }
  0x53   : > { %s1793_s24 = scalar_lea.vmem (!%p1731_p13), [#allocation3], %s1074_s0 }
  0x56   : > { %1501 = dma.done.wait (%p1746_p1), %s230_s1, 2048  }
  0x57   : > { %1503 = vsyncadd (%p1746_p1), %s230_s1, 4294965248  ;;  %s238_s30 = sand.u32 1, %s1530_s19  }
  0x58   : > { %s1075_s7 = sshll.u32 %s238_s30, 6  ;;  %s239_s25 = scalar_lea.sflag [#allocation7], %s238_s30 }
  0x59   : > { %s1800_s11 = scalar_lea.vmem [#allocation6], %s1075_s7 }
  0x5a   : > { %1505 = dma.done.wait (%p1758_p3), %s239_s25, 1024  }
  0x5b   : > { %1507 = vsyncadd (%p1758_p3), %s239_s25, 4294966272  ;;  %s269_s10 = sand.u32 1, %s1518_s16   ;;  %s2064_s9 = sld [smem:[#allocation13_spill]] }
  0x5c   : > { %s1076_s29 = sshll.u32 %s269_s10, 8 }
  0x5d   : > { %s1809_s8 = scalar_lea.vmem [#allocation8], %s1076_s29 }
  0x61   : > { %p1077_p13 = scmp.ne.s32.totalorder %s2064_s9, 0 }
  0x63   : > { %279 = sbr.rel (%p1077_p13) target bundleno = 121 (0x79), region = 48 }
  0x68   : > { %v1573_v0 = vmov 0.0  }
  0x69   : > { %280 = vst [vmem:[#allocation2 + $0xb0] sm:$0xff] %v1573_v0  ;;  %281 = vst [vmem:[#allocation2] sm:$0xff] %v1573_v0 }
  0x6a   : > { %282 = vst [vmem:[#allocation2 + $0xd8] sm:$0xff] %v1573_v0  ;;  %283 = vst [vmem:[#allocation2 + $0x18] sm:$0xff] %v1573_v0 }
  0x6b   : > { %284 = vst [vmem:[#allocation2 + $0x50] sm:$0xff] %v1573_v0  ;;  %285 = vst [vmem:[#allocation2 + $0x68] sm:$0xff] %v1573_v0 }
  0x6c   : > { %286 = vst [vmem:[#allocation2 + $0x30] sm:$0xff] %v1573_v0  ;;  %287 = vst [vmem:[#allocation2 + $0x48] sm:$0xff] %v1573_v0 }
  0x6d   : > { %288 = vst [vmem:[#allocation2 + $0x80] sm:$0xff] %v1573_v0  ;;  %289 = vst [vmem:[#allocation2 + $0x88] sm:$0xff] %v1573_v0 }
  0x6e   : > { %290 = vst [vmem:[#allocation2 + $0xe8] sm:$0xff] %v1573_v0  ;;  %291 = vst [vmem:[#allocation2 + $0xb8] sm:$0xff] %v1573_v0 }
  0x6f   : > { %292 = vst [vmem:[#allocation2 + $0x60] sm:$0xff] %v1573_v0  ;;  %293 = vst [vmem:[#allocation2 + $0xf0] sm:$0xff] %v1573_v0 }
  0x70   : > { %294 = vst [vmem:[#allocation2 + $0x8] sm:$0xff] %v1573_v0  ;;  %295 = vst [vmem:[#allocation2 + $0x78] sm:$0xff] %v1573_v0 }
  0x71   : > { %296 = vst [vmem:[#allocation2 + $0x38] sm:$0xff] %v1573_v0  ;;  %297 = vst [vmem:[#allocation2 + $0x58] sm:$0xff] %v1573_v0 }
  0x72   : > { %298 = vst [vmem:[#allocation2 + $0x40] sm:$0xff] %v1573_v0  ;;  %299 = vst [vmem:[#allocation2 + $0xc8] sm:$0xff] %v1573_v0 }
  0x73   : > { %300 = vst [vmem:[#allocation2 + $0xe0] sm:$0xff] %v1573_v0  ;;  %301 = vst [vmem:[#allocation2 + $0x90] sm:$0xff] %v1573_v0 }
  0x74   : > { %302 = vst [vmem:[#allocation2 + $0x70] sm:$0xff] %v1573_v0  ;;  %303 = vst [vmem:[#allocation2 + $0xc0] sm:$0xff] %v1573_v0 }
  0x75   : > { %304 = vst [vmem:[#allocation2 + $0xa8] sm:$0xff] %v1573_v0  ;;  %305 = vst [vmem:[#allocation2 + $0xd0] sm:$0xff] %v1573_v0 }
  0x76   : > { %306 = vst [vmem:[#allocation2 + $0x10] sm:$0xff] %v1573_v0  ;;  %307 = vst [vmem:[#allocation2 + $0x28] sm:$0xff] %v1573_v0 }
  0x77   : > { %308 = vst [vmem:[#allocation2 + $0xa0] sm:$0xff] %v1573_v0  ;;  %309 = vst [vmem:[#allocation2 + $0xf8] sm:$0xff] %v1573_v0 }
  0x78   : > { %310 = vst [vmem:[#allocation2 + $0x20] sm:$0xff] %v1573_v0  ;;  %311 = vst [vmem:[#allocation2 + $0x98] sm:$0xff] %v1573_v0 }
  0x79 PF: > { %v1338_v1 = vld [vmem:[%s1800_s11 + $0x38] sm:$0xff]   ;;  %v1339_v2 = vld [vmem:[%s1800_s11 + $0x30] sm:$0xff]   ;;  %v1340_v3 = vld [vmem:[%s1800_s11 + $0x28] sm:$0xff]   ;;  %s2065_s2 = sld [smem:[#allocation13_spill]] }
  0x7a   : > { %1137 = vmatprep.subr.bf16.mxu0 %v1338_v1  ;;  %1185 = vmatprep.subr.bf16.mxu1 %v1338_v1  ;;  %v1341_v4 = vld [vmem:[%s1800_s11 + $0x20] sm:$0xff]   ;;  %v1342_v7 = vld [vmem:[%s1800_s11 + $0x18] sm:$0xff]   ;;  %v1343_v8 = vld [vmem:[%s1800_s11 + $0x10] sm:$0xff]  }
  0x7b   : > { %1138 = vmatpush3.bf16.msra.mxu0 %v1338_v1  ;;  %1193 = vmatpush3.bf16.msra.mxu1 %v1338_v1  ;;  %v1346_v5 = vld [vmem:[%s1793_s24] sm:$0xff]   ;;  %v1344_v9 = vld [vmem:[%s1800_s11 + $0x8] sm:$0xff]   ;;  %v1350_v13 = vld [vmem:[%s1793_s24 + $0x10] sm:$0xff]  }
  0x7c   : > { %1139 = vmatprep.subr.bf16.mxu0 %v1339_v2  ;;  %1186 = vmatprep.subr.bf16.mxu1 %v1339_v2  ;;  %v1347_v6 = vld [vmem:[%s1793_s24 + $0x40] sm:$0xff]   ;;  %v1348_v11 = vld [vmem:[%s1793_s24 + $0x8] sm:$0xff]   ;;  %v1351_v14 = vld [vmem:[%s1793_s24 + $0x50] sm:$0xff]  }
  0x7d   : > { %1153 = vmatprep.mubr.bf16.mxu0 %v1346_v5  ;;  %1169 = vmatprep.mubr.bf16.mxu1 %v1347_v6  ;;  %v1345_v10 = vld [vmem:[%s1800_s11] sm:$0xff]   ;;  %v1349_v12 = vld [vmem:[%s1793_s24 + $0x48] sm:$0xff]   ;;  %v1352_v15 = vld [vmem:[%s1793_s24 + $0x18] sm:$0xff]  }
  0x7e   : > { %v1353_v16 = vld [vmem:[%s1793_s24 + $0x58] sm:$0xff]   ;;  %v1354_v17 = vld [vmem:[%s1793_s24 + $0x20] sm:$0xff]   ;;  %v1356_v19 = vld [vmem:[%s1793_s24 + $0x28] sm:$0xff]  }
  0x7f   : > { %1140 = vmatpush3.bf16.msra.mxu0 %v1339_v2  ;;  %1194 = vmatpush3.bf16.msra.mxu1 %v1339_v2  ;;  %v1355_v18 = vld [vmem:[%s1793_s24 + $0x60] sm:$0xff]   ;;  %v1357_v20 = vld [vmem:[%s1793_s24 + $0x68] sm:$0xff]   ;;  %v1358_v21 = vld [vmem:[%s1793_s24 + $0x30] sm:$0xff]   ;;  %p1102_p1 = scmp.ne.s32.totalorder %s2065_s2, 1 }
  0x80   : > { %1141 = vmatprep.subr.bf16.mxu0 %v1340_v3  ;;  %1187 = vmatprep.subr.bf16.mxu1 %v1340_v3  ;;  %v1359_v22 = vld [vmem:[%s1793_s24 + $0x70] sm:$0xff]   ;;  %v1360_v23 = vld [vmem:[%s1793_s24 + $0x38] sm:$0xff]   ;;  %v330_v26 = vld [vmem:[#allocation2 + $0x40] sm:$0xff]  ;;  %s2066_s18 = sld [smem:[#allocation19_spill]] (!%p1102_p1) }
  0x81   : > { %v1361_v24 = vld [vmem:[%s1793_s24 + $0x78] sm:$0xff]   ;;  %v312_v29 = vld [vmem:[#allocation2 + $0xb0] sm:$0xff]  ;;  %v331_v36 = vld [vmem:[#allocation2 + $0xc8] sm:$0xff]  ;;  %s2067_s0 = sld [smem:[#allocation20_spill]] (!%p1102_p1) }
  0x82   : > { %v314_v25 = vld [vmem:[#allocation2 + $0xd8] sm:$0xff]  ;;  %v313_v41 = vld [vmem:[#allocation2] sm:$0xff]  ;;  %v318_v47 = vld [vmem:[#allocation2 + $0x30] sm:$0xff] }
  0x83   : > { %1142 = vmatpush3.bf16.msra.mxu0 %v1340_v3  ;;  %1195 = vmatpush3.bf16.msra.mxu1 %v1340_v3  ;;  %v328_v30 = vld [vmem:[#allocation2 + $0x38] sm:$0xff]  ;;  %v334_v48 = vld [vmem:[#allocation2 + $0x70] sm:$0xff]  ;;  %v332_v54 = vld [vmem:[#allocation2 + $0xe0] sm:$0xff] }
  0x84   : > { %1143 = vmatprep.subr.bf16.mxu0 %v1341_v4  ;;  %1188 = vmatprep.subr.bf16.mxu1 %v1341_v4  ;;  %v315_v35 = vld [vmem:[#allocation2 + $0x18] sm:$0xff]  ;;  %v316_v53 = vld [vmem:[#allocation2 + $0x50] sm:$0xff]  ;;  %v319_v59 = vld [vmem:[#allocation2 + $0x48] sm:$0xff] }
  0x85   : > { %v329_v42 = vld [vmem:[#allocation2 + $0x58] sm:$0xff]  ;;  %v335_v60 = vld [vmem:[#allocation2 + $0xc0] sm:$0xff]  ;;  %v317_v1 = vld [vmem:[#allocation2 + $0x68] sm:$0xff] }
  0x86   : > { %v333_v2 = vld [vmem:[#allocation2 + $0x90] sm:$0xff] }
  0x87   : > { %1144 = vmatpush3.bf16.msra.mxu0 %v1341_v4  ;;  %1196 = vmatpush3.bf16.msra.mxu1 %v1341_v4 }
  0x88   : > { %1145 = vmatprep.subr.bf16.mxu0 %v1342_v7  ;;  %1189 = vmatprep.subr.bf16.mxu1 %v1342_v7 }
  0x8b   : > { %1146 = vmatpush3.bf16.msra.mxu0 %v1342_v7  ;;  %1197 = vmatpush3.bf16.msra.mxu1 %v1342_v7  ;;  %v322_v7 = vld [vmem:[#allocation2 + $0xe8] sm:$0xff] }
  0x8c   : > { %1147 = vmatprep.subr.bf16.mxu0 %v1343_v8  ;;  %1190 = vmatprep.subr.bf16.mxu1 %v1343_v8 }
  0x8f   : > { %1148 = vmatpush3.bf16.msra.mxu0 %v1343_v8  ;;  %1198 = vmatpush3.bf16.msra.mxu1 %v1343_v8  ;;  %v338_v8 = vld [vmem:[#allocation2 + $0x10] sm:$0xff] }
  0x90   : > { %1149 = vmatprep.subr.bf16.mxu0 %v1344_v9  ;;  %1191 = vmatprep.subr.bf16.mxu1 %v1344_v9 }
  0x93   : > { %1150 = vmatpush3.bf16.msra.mxu0 %v1344_v9  ;;  %1199 = vmatpush3.bf16.msra.mxu1 %v1344_v9 }
  0x94   : > { %1151 = vmatprep.subr.bf16.mxu0 %v1345_v10  ;;  %1192 = vmatprep.subr.bf16.mxu1 %v1345_v10 }
  0x97   : > { %1152 = vmatpush3.bf16.msra.mxu0 %v1345_v10  ;;  %1200 = vmatpush3.bf16.msra.mxu1 %v1345_v10 }
  0x9a   : > { %1154 = vmatmul.mubr.bf16.vlgmr.msra.gmra.mxu0 %v1348_v11  ;;  %1170 = vmatmul.mubr.bf16.vlgmr.msra.gmra.mxu1 %v1349_v12 }
  0x9b   : > { %1157 = vmatprep.mubr.bf16.mxu0 %v1350_v13  ;;  %1173 = vmatprep.mubr.bf16.mxu1 %v1351_v14  ;;  %v320_v13 = vld [vmem:[#allocation2 + $0x80] sm:$0xff]  ;;  %v336_v14 = vld [vmem:[#allocation2 + $0xa8] sm:$0xff] }
  0xa2   : > { %1158 = vmatmul.mubr.bf16.gmra.mxu0 %v1352_v15  ;;  %1174 = vmatmul.mubr.bf16.gmra.mxu1 %v1353_v16 }
  0xa3   : > { %1161 = vmatprep.mubr.bf16.mxu0 %v1354_v17  ;;  %1177 = vmatprep.mubr.bf16.mxu1 %v1355_v18 }
  0xaa   : > { %1162 = vmatmul.mubr.bf16.gmra.mxu0 %v1356_v19  ;;  %1178 = vmatmul.mubr.bf16.gmra.mxu1 %v1357_v20  ;;  %v323_v19 = vld [vmem:[#allocation2 + $0xb8] sm:$0xff]  ;;  %v339_v20 = vld [vmem:[#allocation2 + $0x28] sm:$0xff] }
  0xab   : > { %1165 = vmatprep.mubr.bf16.mxu0 %v1358_v21  ;;  %1181 = vmatprep.mubr.bf16.mxu1 %v1359_v22 }
  0xb2   : > { %1166 = vmatmul.mubr.bf16.gmra.mxu0 %v1360_v23  ;;  %1182 = vmatmul.mubr.bf16.gmra.mxu1 %v1361_v24 }
 0x15a   : > { %v1155_v27 = vpop.f32.mrf.mxu0  ;;  %v1171_v28 = vpop.f32.mrf.mxu1 }
 0x15b   : > { %v699_v31 = vadd.f32 %v1155_v27, %v314_v25  ;;  %v715_v32 = vadd.f32 %v1171_v28, %v330_v26  ;;  %v321_v25 = vld [vmem:[#allocation2 + $0x88] sm:$0xff]  ;;  %v337_v26 = vld [vmem:[#allocation2 + $0xd0] sm:$0xff] }
 0x15c   : > { %v570_v33 = vpop.f32.mrf.mxu0  ;;  %v634_v34 = vpop.f32.mrf.mxu1 }
 0x15d   : > { %731 = vst [vmem:[#allocation2 + $0xd8] sm:$0xff] %v699_v31  ;;  %747 = vst [vmem:[#allocation2 + $0x40] sm:$0xff] %v715_v32  ;;  %v697_v37 = vadd.f32 %v570_v33, %v312_v29  ;;  %v713_v38 = vadd.f32 %v634_v34, %v328_v30  ;;  %v326_v31 = vld [vmem:[#allocation2 + $0x8] sm:$0xff]  ;;  %v342_v32 = vld [vmem:[#allocation2 + $0x20] sm:$0xff] }
 0x15e   : > { %v1156_v39 = vpop.f32.mrf.mxu0  ;;  %v1172_v40 = vpop.f32.mrf.mxu1 }
 0x15f   : > { %729 = vst [vmem:[#allocation2 + $0xb0] sm:$0xff] %v697_v37  ;;  %745 = vst [vmem:[#allocation2 + $0x38] sm:$0xff] %v713_v38  ;;  %v700_v43 = vadd.f32 %v1156_v39, %v315_v35  ;;  %v716_v44 = vadd.f32 %v1172_v40, %v331_v36  ;;  %v324_v37 = vld [vmem:[#allocation2 + $0x60] sm:$0xff] }
 0x160   : > { %v573_v45 = vpop.f32.mrf.mxu0  ;;  %v637_v46 = vpop.f32.mrf.mxu1  ;;  %v340_v38 = vld [vmem:[#allocation2 + $0xa0] sm:$0xff] }
 0x161   : > { %732 = vst [vmem:[#allocation2 + $0x18] sm:$0xff] %v700_v43  ;;  %748 = vst [vmem:[#allocation2 + $0xc8] sm:$0xff] %v716_v44  ;;  %v698_v49 = vadd.f32 %v573_v45, %v313_v41  ;;  %v714_v50 = vadd.f32 %v637_v46, %v329_v42  ;;  %v327_v43 = vld [vmem:[#allocation2 + $0x78] sm:$0xff] }
 0x162   : > { %v1159_v51 = vpop.f32.mrf.mxu0  ;;  %v1175_v52 = vpop.f32.mrf.mxu1  ;;  %v343_v44 = vld [vmem:[#allocation2 + $0x98] sm:$0xff] }
 0x163   : > { %730 = vst [vmem:[#allocation2] sm:$0xff] %v698_v49  ;;  %746 = vst [vmem:[#allocation2 + $0x58] sm:$0xff] %v714_v50  ;;  %v703_v55 = vadd.f32 %v1159_v51, %v318_v47  ;;  %v719_v56 = vadd.f32 %v1175_v52, %v334_v48  ;;  %v325_v49 = vld [vmem:[#allocation2 + $0xf0] sm:$0xff]  ;;  %v341_v50 = vld [vmem:[#allocation2 + $0xf8] sm:$0xff] }
 0x164   : > { %v586_v57 = vpop.f32.mrf.mxu0  ;;  %v650_v58 = vpop.f32.mrf.mxu1 }
 0x165   : > { %735 = vst [vmem:[#allocation2 + $0x30] sm:$0xff] %v703_v55  ;;  %751 = vst [vmem:[#allocation2 + $0x70] sm:$0xff] %v719_v56  ;;  %v701_v61 = vadd.f32 %v586_v57, %v316_v53  ;;  %v717_v62 = vadd.f32 %v650_v58, %v332_v54 }
 0x166   : > { %v1160_v63 = vpop.f32.mrf.mxu0  ;;  %v1176_v0 = vpop.f32.mrf.mxu1 }
 0x167   : > { %733 = vst [vmem:[#allocation2 + $0x50] sm:$0xff] %v701_v61  ;;  %749 = vst [vmem:[#allocation2 + $0xe0] sm:$0xff] %v717_v62  ;;  %v704_v3 = vadd.f32 %v1160_v63, %v319_v59  ;;  %v720_v4 = vadd.f32 %v1176_v0, %v335_v60 }
 0x168   : > { %v589_v5 = vpop.f32.mrf.mxu0  ;;  %v653_v6 = vpop.f32.mrf.mxu1 }
 0x169   : > { %736 = vst [vmem:[#allocation2 + $0x48] sm:$0xff] %v704_v3  ;;  %752 = vst [vmem:[#allocation2 + $0xc0] sm:$0xff] %v720_v4  ;;  %v702_v9 = vadd.f32 %v589_v5, %v317_v1  ;;  %v718_v10 = vadd.f32 %v653_v6, %v333_v2 }
 0x16a   : > { %v1163_v11 = vpop.f32.mrf.mxu0  ;;  %v1179_v12 = vpop.f32.mrf.mxu1 }
 0x16b   : > { %734 = vst [vmem:[#allocation2 + $0x68] sm:$0xff] %v702_v9  ;;  %750 = vst [vmem:[#allocation2 + $0x90] sm:$0xff] %v718_v10  ;;  %v707_v15 = vadd.f32 %v1163_v11, %v322_v7  ;;  %v723_v16 = vadd.f32 %v1179_v12, %v338_v8 }
 0x16c   : > { %v602_v17 = vpop.f32.mrf.mxu0  ;;  %v666_v18 = vpop.f32.mrf.mxu1 }
 0x16d   : > { %739 = vst [vmem:[#allocation2 + $0xe8] sm:$0xff] %v707_v15  ;;  %755 = vst [vmem:[#allocation2 + $0x10] sm:$0xff] %v723_v16  ;;  %v705_v21 = vadd.f32 %v602_v17, %v320_v13  ;;  %v721_v22 = vadd.f32 %v666_v18, %v336_v14 }
 0x16e   : > { %v1164_v23 = vpop.f32.mrf.mxu0  ;;  %v1180_v24 = vpop.f32.mrf.mxu1 }
 0x16f   : > { %737 = vst [vmem:[#allocation2 + $0x80] sm:$0xff] %v705_v21  ;;  %753 = vst [vmem:[#allocation2 + $0xa8] sm:$0xff] %v721_v22  ;;  %v708_v27 = vadd.f32 %v1164_v23, %v323_v19  ;;  %v724_v28 = vadd.f32 %v1180_v24, %v339_v20 }
 0x170   : > { %v605_v29 = vpop.f32.mrf.mxu0  ;;  %v669_v30 = vpop.f32.mrf.mxu1 }
 0x171   : > { %740 = vst [vmem:[#allocation2 + $0xb8] sm:$0xff] %v708_v27  ;;  %756 = vst [vmem:[#allocation2 + $0x28] sm:$0xff] %v724_v28  ;;  %v706_v33 = vadd.f32 %v605_v29, %v321_v25  ;;  %v722_v34 = vadd.f32 %v669_v30, %v337_v26 }
 0x172   : > { %v1167_v35 = vpop.f32.mrf.mxu0  ;;  %v1183_v36 = vpop.f32.mrf.mxu1 }
 0x173   : > { %738 = vst [vmem:[#allocation2 + $0x88] sm:$0xff] %v706_v33  ;;  %754 = vst [vmem:[#allocation2 + $0xd0] sm:$0xff] %v722_v34  ;;  %v711_v39 = vadd.f32 %v1167_v35, %v326_v31  ;;  %v727_v40 = vadd.f32 %v1183_v36, %v342_v32 }
 0x174   : > { %v618_v41 = vpop.f32.mrf.mxu0  ;;  %v682_v42 = vpop.f32.mrf.mxu1 }
 0x175   : > { %743 = vst [vmem:[#allocation2 + $0x8] sm:$0xff] %v711_v39  ;;  %759 = vst [vmem:[#allocation2 + $0x20] sm:$0xff] %v727_v40  ;;  %v709_v45 = vadd.f32 %v618_v41, %v324_v37  ;;  %v725_v46 = vadd.f32 %v682_v42, %v340_v38 }
 0x176   : > { %v1168_v47 = vpop.f32.mrf.mxu0  ;;  %v1184_v48 = vpop.f32.mrf.mxu1 }
 0x177   : > { %741 = vst [vmem:[#allocation2 + $0x60] sm:$0xff] %v709_v45  ;;  %757 = vst [vmem:[#allocation2 + $0xa0] sm:$0xff] %v725_v46  ;;  %v712_v51 = vadd.f32 %v1168_v47, %v327_v43  ;;  %v728_v52 = vadd.f32 %v1184_v48, %v343_v44  ;;  %764 = sbr.rel (%p1102_p1) target bundleno = 411 (0x19b), region = 52 }
 0x178   : > { %v621_v53 = vpop.f32.mrf.mxu0  ;;  %v685_v54 = vpop.f32.mrf.mxu1 }
 0x179   : > { %744 = vst [vmem:[#allocation2 + $0x78] sm:$0xff] %v712_v51  ;;  %760 = vst [vmem:[#allocation2 + $0x98] sm:$0xff] %v728_v52  ;;  %v710_v55 = vadd.f32 %v621_v53, %v325_v49  ;;  %v726_v56 = vadd.f32 %v685_v54, %v341_v50 }
 0x17b   : > { %742 = vst [vmem:[#allocation2 + $0xf0] sm:$0xff] %v710_v55  ;;  %758 = vst [vmem:[#allocation2 + $0xf8] sm:$0xff] %v726_v56 }
 0x17c   : > { %v765_v57 = vld [vmem:[#allocation2 + $0xb0] sm:$0xff]  ;;  %v1840_v58 = vld [vmem:[%s2066_s18] ss:$0 sm:$0xff]  ;;  %v767_v62 = vld [vmem:[#allocation2 + $0xd8] sm:$0xff] }
 0x17d   : > { %v1845_v59 = vld [vmem:[%s2067_s0] ss:$0 sm:$0xff]  ;;  %v804_v60 = vmul.f32 %v1840_v58, %v765_v57  ;;  %v768_v63 = vld [vmem:[#allocation2 + $0x18] sm:$0xff]  ;;  %v806_v1 = vmul.f32 %v1840_v58, %v767_v62  ;;  %v769_v3 = vld [vmem:[#allocation2 + $0x50] sm:$0xff] }
 0x17e   : > { %v766_v61 = vld [vmem:[#allocation2] sm:$0xff]  ;;  %v807_v2 = vmul.f32 %v1840_v58, %v768_v63  ;;  %v770_v4 = vld [vmem:[#allocation2 + $0x68] sm:$0xff]  ;;  %v771_v5 = vld [vmem:[#allocation2 + $0x30] sm:$0xff]  ;;  %v808_v7 = vmul.f32 %v1840_v58, %v769_v3 }
 0x17f   : > { %v805_v0 = vmul.f32 %v1840_v58, %v766_v61  ;;  %v843_v6 = vadd.f32 %v1845_v59, %v804_v60  ;;  %v809_v8 = vmul.f32 %v1840_v58, %v770_v4  ;;  %v810_v9 = vmul.f32 %v1840_v58, %v771_v5  ;;  %v772_v10 = vld [vmem:[#allocation2 + $0x48] sm:$0xff]  ;;  %v773_v15 = vld [vmem:[#allocation2 + $0x80] sm:$0xff]  ;;  %v776_v22 = vld [vmem:[#allocation2 + $0xb8] sm:$0xff] }
 0x180   : > { %v845_v12 = vadd.f32 %v1845_v59, %v806_v1  ;;  %v846_v13 = vadd.f32 %v1845_v59, %v807_v2  ;;  %v811_v14 = vmul.f32 %v1840_v58, %v772_v10  ;;  %v847_v17 = vadd.f32 %v1845_v59, %v808_v7  ;;  %v774_v20 = vld [vmem:[#allocation2 + $0x88] sm:$0xff]  ;;  %v777_v27 = vld [vmem:[#allocation2 + $0x60] sm:$0xff]  ;;  %v780_v34 = vld [vmem:[#allocation2 + $0x78] sm:$0xff] }
 0x181   : > { %v844_v11 = vadd.f32 %v1845_v59, %v805_v0  ;;  %v875_v16 = vmax.f32 %v843_v6, 0.0  ;;  %v848_v18 = vadd.f32 %v1845_v59, %v809_v8  ;;  %v849_v19 = vadd.f32 %v1845_v59, %v810_v9  ;;  %v775_v21 = vld [vmem:[#allocation2 + $0xe8] sm:$0xff]  ;;  %v781_v47 = vld [vmem:[#allocation2 + $0x38] sm:$0xff]  ;;  %v783_v53 = vld [vmem:[#allocation2 + $0x40] sm:$0xff] }
 0x182   : > { %v877_v24 = vmax.f32 %v845_v12, 0.0  ;;  %v878_v25 = vmax.f32 %v846_v13, 0.0  ;;  %v850_v26 = vadd.f32 %v1845_v59, %v811_v14  ;;  %v778_v28 = vld [vmem:[#allocation2 + $0xf0] sm:$0xff]  ;;  %v779_v29 = vld [vmem:[#allocation2 + $0x8] sm:$0xff]  ;;  %v879_v30 = vmax.f32 %v847_v17, 0.0  ;;  %v782_v52 = vld [vmem:[#allocation2 + $0x58] sm:$0xff] }
 0x183   : > { %v876_v23 = vmax.f32 %v844_v11, 0.0  ;;  %907 = vst [vmem:[%s1809_s8] sm:$0xff] %v875_v16  ;;  %v880_v31 = vmax.f32 %v848_v18, 0.0  ;;  %v881_v32 = vmax.f32 %v849_v19, 0.0  ;;  %v812_v33 = vmul.f32 %v1840_v58, %v773_v15  ;;  %v784_v54 = vld [vmem:[#allocation2 + $0xc8] sm:$0xff]  ;;  %v785_v61 = vld [vmem:[#allocation2 + $0xe0] sm:$0xff]  ;;  %v786_v62 = vld [vmem:[#allocation2 + $0x90] sm:$0xff] }
 0x184   : > { %909 = vst [vmem:[%s1809_s8 + $0x10] sm:$0xff] %v877_v24  ;;  %910 = vst [vmem:[%s1809_s8 + $0x18] sm:$0xff] %v878_v25  ;;  %v882_v35 = vmax.f32 %v850_v26, 0.0  ;;  %v813_v36 = vmul.f32 %v1840_v58, %v774_v20  ;;  %v814_v37 = vmul.f32 %v1840_v58, %v775_v21  ;;  %v815_v38 = vmul.f32 %v1840_v58, %v776_v22  ;;  %v787_v63 = vld [vmem:[#allocation2 + $0x70] sm:$0xff]  ;;  %v788_v4 = vld [vmem:[#allocation2 + $0xc0] sm:$0xff] }
 0x185   : > { %908 = vst [vmem:[%s1809_s8 + $0x8] sm:$0xff] %v876_v23  ;;  %911 = vst [vmem:[%s1809_s8 + $0x20] sm:$0xff] %v879_v30  ;;  %v851_v39 = vadd.f32 %v1845_v59, %v812_v33  ;;  %v816_v40 = vmul.f32 %v1840_v58, %v777_v27  ;;  %v817_v41 = vmul.f32 %v1840_v58, %v778_v28  ;;  %v789_v17 = vld [vmem:[#allocation2 + $0xa8] sm:$0xff]  ;;  %v790_v22 = vld [vmem:[#allocation2 + $0xd0] sm:$0xff] }
 0x186   : > { %912 = vst [vmem:[%s1809_s8 + $0x28] sm:$0xff] %v880_v31  ;;  %913 = vst [vmem:[%s1809_s8 + $0x30] sm:$0xff] %v881_v32  ;;  %v818_v42 = vmul.f32 %v1840_v58, %v779_v29  ;;  %v852_v43 = vadd.f32 %v1845_v59, %v813_v36  ;;  %v853_v44 = vadd.f32 %v1845_v59, %v814_v37  ;;  %v791_v23 = vld [vmem:[#allocation2 + $0x10] sm:$0xff]  ;;  %v792_v24 = vld [vmem:[#allocation2 + $0x28] sm:$0xff] }
 0x187   : > { %914 = vst [vmem:[%s1809_s8 + $0x38] sm:$0xff] %v882_v35  ;;  %v854_v45 = vadd.f32 %v1845_v59, %v815_v38  ;;  %v819_v46 = vmul.f32 %v1840_v58, %v780_v34  ;;  %v883_v48 = vmax.f32 %v851_v39, 0.0  ;;  %v855_v49 = vadd.f32 %v1845_v59, %v816_v40  ;;  %v793_v29 = vld [vmem:[#allocation2 + $0xa0] sm:$0xff]  ;;  %v794_v30 = vld [vmem:[#allocation2 + $0xf8] sm:$0xff] }
 0x188   : > { %v856_v50 = vadd.f32 %v1845_v59, %v817_v41  ;;  %v857_v51 = vadd.f32 %v1845_v59, %v818_v42  ;;  %v884_v55 = vmax.f32 %v852_v43, 0.0  ;;  %v885_v56 = vmax.f32 %v853_v44, 0.0  ;;  %v795_v31 = vld [vmem:[#allocation2 + $0x20] sm:$0xff]  ;;  %v796_v36 = vld [vmem:[#allocation2 + $0x98] sm:$0xff] }
 0x189   : > { %v886_v57 = vmax.f32 %v854_v45, 0.0  ;;  %v858_v60 = vadd.f32 %v1845_v59, %v819_v46  ;;  %915 = vst [vmem:[%s1809_s8 + $0x40] sm:$0xff] %v883_v48  ;;  %v887_v0 = vmax.f32 %v855_v49, 0.0  ;;  %v820_v3 = vmul.f32 %v1840_v58, %v781_v47 }
 0x18a   : > { %v888_v1 = vmax.f32 %v856_v50, 0.0  ;;  %v889_v2 = vmax.f32 %v857_v51, 0.0  ;;  %916 = vst [vmem:[%s1809_s8 + $0x48] sm:$0xff] %v884_v55  ;;  %917 = vst [vmem:[%s1809_s8 + $0x50] sm:$0xff] %v885_v56  ;;  %v821_v6 = vmul.f32 %v1840_v58, %v782_v52  ;;  %v822_v7 = vmul.f32 %v1840_v58, %v783_v53 }
 0x18b   : > { %918 = vst [vmem:[%s1809_s8 + $0x58] sm:$0xff] %v886_v57  ;;  %v890_v5 = vmax.f32 %v858_v60, 0.0  ;;  %v823_v8 = vmul.f32 %v1840_v58, %v784_v54  ;;  %919 = vst [vmem:[%s1809_s8 + $0x60] sm:$0xff] %v887_v0  ;;  %v859_v9 = vadd.f32 %v1845_v59, %v820_v3  ;;  %v824_v10 = vmul.f32 %v1840_v58, %v785_v61 }
 0x18c   : > { %920 = vst [vmem:[%s1809_s8 + $0x68] sm:$0xff] %v888_v1  ;;  %921 = vst [vmem:[%s1809_s8 + $0x70] sm:$0xff] %v889_v2  ;;  %v825_v11 = vmul.f32 %v1840_v58, %v786_v62  ;;  %v826_v12 = vmul.f32 %v1840_v58, %v787_v63  ;;  %v860_v13 = vadd.f32 %v1845_v59, %v821_v6 }
 0x18d   : > { %922 = vst [vmem:[%s1809_s8 + $0x78] sm:$0xff] %v890_v5  ;;  %v861_v14 = vadd.f32 %v1845_v59, %v822_v7  ;;  %v862_v15 = vadd.f32 %v1845_v59, %v823_v8  ;;  %v827_v16 = vmul.f32 %v1840_v58, %v788_v4  ;;  %v891_v18 = vmax.f32 %v859_v9, 0.0 }
 0x18e   : > { %v863_v19 = vadd.f32 %v1845_v59, %v824_v10  ;;  %v864_v20 = vadd.f32 %v1845_v59, %v825_v11  ;;  %v865_v21 = vadd.f32 %v1845_v59, %v826_v12  ;;  %v892_v25 = vmax.f32 %v860_v13, 0.0 }
 0x18f   : > { %v893_v26 = vmax.f32 %v861_v14, 0.0  ;;  %v894_v27 = vmax.f32 %v862_v15, 0.0  ;;  %v866_v28 = vadd.f32 %v1845_v59, %v827_v16  ;;  %923 = vst [vmem:[%s1809_s8 + $0x80] sm:$0xff] %v891_v18  ;;  %v828_v35 = vmul.f32 %v1840_v58, %v789_v17 }
 0x190   : > { %v895_v32 = vmax.f32 %v863_v19, 0.0  ;;  %v896_v33 = vmax.f32 %v864_v20, 0.0  ;;  %v897_v34 = vmax.f32 %v865_v21, 0.0  ;;  %924 = vst [vmem:[%s1809_s8 + $0x88] sm:$0xff] %v892_v25  ;;  %v829_v38 = vmul.f32 %v1840_v58, %v790_v22 }
 0x191   : > { %925 = vst [vmem:[%s1809_s8 + $0x90] sm:$0xff] %v893_v26  ;;  %926 = vst [vmem:[%s1809_s8 + $0x98] sm:$0xff] %v894_v27  ;;  %v898_v37 = vmax.f32 %v866_v28, 0.0  ;;  %v830_v39 = vmul.f32 %v1840_v58, %v791_v23  ;;  %v831_v40 = vmul.f32 %v1840_v58, %v792_v24  ;;  %v867_v41 = vadd.f32 %v1845_v59, %v828_v35 }
 0x192   : > { %927 = vst [vmem:[%s1809_s8 + $0xa0] sm:$0xff] %v895_v32  ;;  %928 = vst [vmem:[%s1809_s8 + $0xa8] sm:$0xff] %v896_v33  ;;  %v832_v42 = vmul.f32 %v1840_v58, %v793_v29  ;;  %v833_v43 = vmul.f32 %v1840_v58, %v794_v30  ;;  %v834_v44 = vmul.f32 %v1840_v58, %v795_v31 }
 0x193   : > { %929 = vst [vmem:[%s1809_s8 + $0xb0] sm:$0xff] %v897_v34  ;;  %930 = vst [vmem:[%s1809_s8 + $0xb8] sm:$0xff] %v898_v37  ;;  %v868_v45 = vadd.f32 %v1845_v59, %v829_v38  ;;  %v869_v46 = vadd.f32 %v1845_v59, %v830_v39  ;;  %v870_v47 = vadd.f32 %v1845_v59, %v831_v40  ;;  %v899_v49 = vmax.f32 %v867_v41, 0.0 }
 0x194   : > { %v835_v48 = vmul.f32 %v1840_v58, %v796_v36  ;;  %v871_v50 = vadd.f32 %v1845_v59, %v832_v42  ;;  %v872_v51 = vadd.f32 %v1845_v59, %v833_v43  ;;  %v873_v52 = vadd.f32 %v1845_v59, %v834_v44 }
 0x195   : > { %v900_v53 = vmax.f32 %v868_v45, 0.0  ;;  %v901_v54 = vmax.f32 %v869_v46, 0.0  ;;  %v902_v55 = vmax.f32 %v870_v47, 0.0  ;;  %931 = vst [vmem:[%s1809_s8 + $0xc0] sm:$0xff] %v899_v49 }
 0x196   : > { %v874_v56 = vadd.f32 %v1845_v59, %v835_v48  ;;  %v903_v57 = vmax.f32 %v871_v50, 0.0  ;;  %v904_v60 = vmax.f32 %v872_v51, 0.0  ;;  %v905_v58 = vmax.f32 %v873_v52, 0.0 }
 0x197   : > { %932 = vst [vmem:[%s1809_s8 + $0xc8] sm:$0xff] %v900_v53  ;;  %933 = vst [vmem:[%s1809_s8 + $0xd0] sm:$0xff] %v901_v54 }
 0x198   : > { %934 = vst [vmem:[%s1809_s8 + $0xd8] sm:$0xff] %v902_v55  ;;  %v906_v61 = vmax.f32 %v874_v56, 0.0  ;;  %935 = vst [vmem:[%s1809_s8 + $0xe0] sm:$0xff] %v903_v57 }
 0x199   : > { %936 = vst [vmem:[%s1809_s8 + $0xe8] sm:$0xff] %v904_v60  ;;  %937 = vst [vmem:[%s1809_s8 + $0xf0] sm:$0xff] %v905_v58 }
 0x19a   : > { %938 = vst [vmem:[%s1809_s8 + $0xf8] sm:$0xff] %v906_v61 }
 0x19b PF: > { %s2068_s1 = sld [smem:[#allocation14_spill]]  ;;  %s953_s9 = sshll.u32 %s1809_s8, 4  ;;  %s1950_s9 = int_to_ptr.vmem [resolvable:$true] %s953_s9 }
 0x19c   : > { %s2069_s25 = sld [smem:[#allocation21_spill]]  ;;  %s1954_s2 = scalar_lea.sflag [#allocation5], %s269_s10 }
 0x19d   : > { %s1418_s14 = scalar_lea.vmem %s1950_s9, 4096  ;;  %s1574_s6 = smov [#allocation8]  }
 0x19e   : > { %p1419_p3 = scmp.ne.s32.totalorder %s1950_s9, %s1418_s14  ;;  %s1422_s18 = sshll.u32 %s1574_s6, 4  ;;  %s1423_s18 = int_to_ptr.vmem [resolvable:$false] %s1422_s18 }
 0x19f   : > { %s1424_s4 = scalar_lea.vmem %s1423_s18, 8192  ;;  %p1425_p11 = scmp.lt.s32.totalorder %s1950_s9, %s1423_s18 }
 0x1a0   : > { %p1420_p0 = pnand %p1419_p3, %p1764_p7  ;;  %p1426_p4 = scmp.lt.s32.totalorder %s1424_s4, %s1418_s14 }
 0x1a1   : > { %s1112_s24 = sshll.u32 %s2068_s1, 12 }
 0x1a2   : > { %s2070_s11 = smov %s2069_s25  ;;  %s1947_s29 = scalar_lea.hbm %s2069_s25, %s1112_s24 }
 0x1a3   : > { %p1421_p10 = pneg %p1420_p0  ;;  %p1427_p9 = por %p1426_p4, %p1425_p11 }
 0x1a5   : > { %p1428_p12 = pnand %p1427_p9, %p1421_p10 }
 0x1a7   : > { %1431 = shalt.err (!%p1428_p12)
}
 0x1a8   : > { %s1432_s10 = scalar_lea.hbm %s1947_s29, 4096  ;;  %s1436_s0 = scalar_lea.hbm %s2070_s11, 8192 }
 0x1a9   : > { %p1433_p8 = scmp.ne.s32.totalorder %s1947_s29, %s1432_s10  ;;  %p1437_p13 = scmp.lt.s32.totalorder %s1947_s29, %s2070_s11 }
 0x1aa   : > { %p1438_p1 = scmp.lt.s32.totalorder %s1436_s0, %s1432_s10 }
 0x1ab   : > { %p1434_p6 = pnand %p1433_p8, %p1764_p7 }
 0x1ac   : > { %p1439_p3 = por %p1438_p1, %p1437_p13 }
 0x1ad   : > { %p1435_p2 = pneg %p1434_p6 }
 0x1af   : > { %p1440_p0 = pnand %p1439_p3, %p1435_p2 }
 0x1b1   : > { %1443 = shalt.err (!%p1440_p0)
}
 0x1b2   : > { %s1575_s30 = smov 128   ;;  %s1576_s7 = smov 8  }
 0x1b3   : > { %1205 = dma.vmem_to_hbm [thread:$0]  (%p1764_p7), %s1950_s9, 4096, %s1947_s29, %s1954_s2, %s1575_s30, %s1575_s30, %s1576_s7  }
 0x1b4 PF: > { %s2071_s25 = sld [smem:[#allocation12_spill]]  ;;  %p1219_p10 = scmp.ge.s32.totalorder %s1566_s28, 2 }
 0x1b6   : > { %p1215_p11 = pnand %p1219_p10, %p1770_p5 }
 0x1b8   : > { %p1216_p4 = pneg %p1215_p11 }
 0x1ba   : > { %s968_s14 = sand.u32 1, %s2071_s25  }
 0x1bb   : > { %s969_s6 = scalar_lea.sflag [#allocation5], %s968_s14 }
 0x1bc   : > { %1509 = dma.done.wait (%p1216_p4), %s969_s6, 4096  }
 0x1bd   : > { %1511 = vsyncadd (%p1216_p4), %s969_s6, 4294963200  ;;  %s23_s28 = sadd.s32 1, %s1566_s28   ;;  %s2073_s5 = sld [smem:[#allocation15_spill]] }
 0x1be   : > { %p1982_p9 = scmp.ge.s32.totalorder %s23_s28, 6   ;;  %s2074_s29 = sld [smem:[#allocation16_spill]] }
 0x1bf   : > { %s2076_s15 = smov %s1518_s16  ;;  %s2077_s16 = smov %s1522_s17 }
 0x1c0   : > { %s2078_s17 = smov %s1703_s12  ;;  %s2079_s18 = smov %s1530_s19 }
 0x1c1   : > { %s2080_s19 = smov %s1534_s20  ;;  %s2081_s20 = smov %s1741_s3 }
 0x1c2   : > { %s2082_s21 = smov %s1542_s22  ;;  %s2083_s22 = smov %s1546_s23 }
 0x1c3   : > { %s2084_s23 = smov %s1706_s13  ;;  %s2085_s24 = smov %s1558_s26 }
 0x1c4   : > { %s2086_s25 = smov %s1562_s27  ;;  %s2087_s26 = smov %s2073_s5 }
 0x1c5   : > { %s2088_s27 = smov %s2074_s29  ;;  %22 = sbr.rel (!%p1982_p9) target bundleno = 18 (0x12), region = 102 }
 0x1ca   :  { %974 = vsyncpa [#allocation4], 1 }
 0x1cb   :  { %976 = vsyncpa [#allocation4 + $0x1], 1 }
 0x1cc   :  { %977 = vsyncpa [#allocation7], 1 }
 0x1cd   :  { %979 = vsyncpa [#allocation7 + $0x1], 1 }
 0x1ce   :  { %980 = vsyncpa [#allocation5], 1 }
 0x1cf   :  { %982 = vsyncpa [#allocation5 + $0x1], 1 }

</bundles_post_ra>
